<compile_context>
chip_gen: v7x
topology: tpu7x:2x2x1
jax: 0.10.0
libtpu: 0.0.40
codegen_flags: <defaults>
</compile_context>

<pallas_src>
import jax
import jax.numpy as jnp
from jax.experimental import pallas as pl
from jax.experimental.pallas import tpu as pltpu

_LANE = 128
_SUBLANE = 8
_TM_TARGET = 65536          # pixels / channel / grid step  (~2 MiB HBM per step)


def _round_up(x: int, m: int) -> int:
    return ((x + m - 1) // m) * m


def _vmem_limit_bytes() -> int:
    cap = 128 * 1024 * 1024
    try:
        cap = int(getattr(pltpu.get_tpu_info(), "vmem_capacity_bytes", cap))
    except Exception:
        pass
    # Leave half of physical VMEM to the compiler; never ask for more than 100 MiB.
    return min(cap // 2, 100 * 1024 * 1024)


def _conv1x1_kernel(w_ref, b_ref, x_ref, o_ref):
    # w_ref: (C_out, C_in) SMEM      b_ref: (C_out,) SMEM
    # x_ref: (TN, C_in, TS, 128) VMEM  o_ref: (TN, C_out, TS, 128) VMEM
    c_in = x_ref.shape[1]
    c_out = o_ref.shape[1]
    x = x_ref[...].astype(jnp.float32)              # (TN, C_in, TS, 128)
    for co in range(c_out):                         # unrolled: C_out in {3, 5}
        acc = x[:, 0] * w_ref[co, 0]                # scalar * full slab (VPU FMA)
        for ci in range(1, c_in):                   # unrolled: C_in == 3
            acc = acc + x[:, ci] * w_ref[co, ci]
        o_ref[:, co, :, :] = (acc + b_ref[co]).astype(o_ref.dtype)


def conv1x1_pallas(x_nchw: jax.Array, weight: jax.Array, bias: jax.Array) -> jax.Array:
    """1x1 conv, NCHW in/out. weight: (C_out, C_in, 1, 1), bias: (C_out,)."""
    N, C_in, H, W = x_nchw.shape
    C_out = weight.shape[0]
    HW = H * W

    # Lane-dense re-layout: pixel axis -> (S rows, 128 lanes), zero-padded if needed.
    S = pl.cdiv(HW, _LANE)
    HWp = S * _LANE
    x3 = x_nchw.reshape(N, C_in, HW)
    if HWp != HW:
        x3 = jnp.pad(x3, ((0, 0), (0, 0), (0, HWp - HW)))
    x4 = x3.reshape(N, C_in, S, _LANE)

    w_mat = weight.reshape(C_out, C_in)
    b_vec = bias.reshape(C_out)

    # --- Tile selection ----------------------------------------------------
    rows_target = max(_SUBLANE, _TM_TARGET // _LANE)      # 512 (x,128)-rows per step
    if S >= rows_target:
        TN, TS = 1, rows_target                           # big image: tile the rows
    else:
        TS = S                                            # small image: whole image,
        TN = max(1, min(N, rows_target // S))             # fold batch into the block
    # Keep >= 2 grid steps when possible so both v7x TensorCores stay busy.
    if pl.cdiv(N, TN) * pl.cdiv(S, TS) < 2:
        if N >= 2:
            TN = pl.cdiv(N, 2)
        elif S > _SUBLANE:
            TS = min(S, _round_up(pl.cdiv(S, 2), _SUBLANE))
    grid = (pl.cdiv(N, TN), pl.cdiv(S, TS))

    out4 = pl.pallas_call(
        _conv1x1_kernel,
        out_shape=jax.ShapeDtypeStruct((N, C_out, S, _LANE), x_nchw.dtype),
        grid=grid,
        in_specs=[
            pl.BlockSpec(memory_space=pltpu.MemorySpace.SMEM),   # weights (resident)
            pl.BlockSpec(memory_space=pltpu.MemorySpace.SMEM),   # bias (resident)
            pl.BlockSpec((TN, C_in, TS, _LANE), lambda n, m: (n, 0, m, 0)),
        ],
        out_specs=pl.BlockSpec((TN, C_out, TS, _LANE), lambda n, m: (n, 0, m, 0)),
        compiler_params=pltpu.CompilerParams(
            dimension_semantics=("parallel", "parallel"),
            vmem_limit_bytes=_vmem_limit_bytes(),
        ),
    )(w_mat, b_vec, x4)

    # (N, C_out, S, 128) -> NCHW (pure reshape; slice only if HW was padded).
    out3 = out4.reshape(N, C_out, HWp)
    if HWp != HW:
        out3 = out3[:, :, :HW]
    return out3.reshape(N, C_out, H, W)


class MutableConvPallas:
    """JAX/Pallas equivalent of the PyTorch MutableConv module."""

    def __init__(self, key):
        k1, k2, k3, k4 = jax.random.split(key, 4)
        # nn.Conv2d(3, 3, kernel_size=1): weight (3, 3, 1, 1), bias (3,)
        # nn.Conv2d(3, 5, kernel_size=1): weight (5, 3, 1, 1), bias (5,)
        bound = 1.0 / jnp.sqrt(3.0)
        self.w1 = jax.random.uniform(k1, (3, 3, 1, 1), jnp.float32, -bound, bound)
        self.b1 = jax.random.uniform(k2, (3,), jnp.float32, -bound, bound)
        self.w2 = jax.random.uniform(k3, (5, 3, 1, 1), jnp.float32, -bound, bound)
        self.b2 = jax.random.uniform(k4, (5,), jnp.float32, -bound, bound)

    def __call__(self, x: jax.Array, index: int) -> jax.Array:
        # `index` is a static Python int in the original module.
        if index == 0:
            return conv1x1_pallas(x, self.w1, self.b1)
        else:
            return conv1x1_pallas(x, self.w2, self.b2)


if __name__ == "__main__":
    key = jax.random.PRNGKey(0)
    kx, kp = jax.random.split(key)

    # Small NCHW input consistent with Conv2d(3, ...): batch=2, C=3, 16x16 spatial.
    x = jax.random.normal(kx, (2, 3, 16, 16), jnp.float32)

    model = MutableConvPallas(kp)

    out0 = model(x, index=0)   # conv1: (2, 3, 16, 16)
    out1 = model(x, index=1)   # conv2: (2, 5, 16, 16)
    jax.block_until_ready(out0)
    jax.block_until_ready(out1)

    # Reference check against plain-JAX 1x1 conv (channel matmul).
    def ref_conv1x1(x, w, b):
        return jnp.einsum("nchw,oc->nohw", x, w.reshape(w.shape[0], w.shape[1])) \
               + b[None, :, None, None]

    ref0 = ref_conv1x1(x, model.w1, model.b1)
    ref1 = ref_conv1x1(x, model.w2, model.b2)

    assert out0.shape == (2, 3, 16, 16)
    assert out1.shape == (2, 5, 16, 16)
    assert jnp.allclose(out0, ref0, atol=1e-5, rtol=1e-5)
    assert jnp.allclose(out1, ref1, atol=1e-5, rtol=1e-5)

    print("KERNEL_OK")
</pallas_src>

<mosaic_0001>
module attributes {stable_mosaic.version = 11 : i64} {
  func.func @_conv1x1_kernel(%arg0: i32, %arg1: i32, %arg2: memref<3x3xf32, #tpu.memory_space<smem>>, %arg3: memref<3xf32, #tpu.memory_space<smem>>, %arg4: memref<1x3x2x128xf32, #tpu.memory_space<vmem>>, %arg5: memref<1x3x2x128xf32, #tpu.memory_space<vmem>>) attributes {dimension_semantics = [#tpu.dimension_semantics<parallel>, #tpu.dimension_semantics<parallel>], iteration_bounds = array<i64: 2, 1>, scalar_prefetch = 0 : i64, scratch_operands = 0 : i64, tpu.core_type = #tpu.core_type<tc>, window_params = [{transform_indices = @transform_0, window_bounds = array<i64: 3, 3>}, {transform_indices = @transform_1, window_bounds = array<i64: 3>}, {transform_indices = @transform_2, window_bounds = array<i64: 1, 3, 2, 128>}, {transform_indices = @transform_3, window_bounds = array<i64: 1, 3, 2, 128>}]} {
    %c0 = arith.constant 0 : index
    %c0_0 = arith.constant 0 : index
    %c0_1 = arith.constant 0 : index
    %c0_2 = arith.constant 0 : index
    %0 = vector.load %arg4[%c0, %c0_0, %c0_1, %c0_2] : memref<1x3x2x128xf32, #tpu.memory_space<vmem>>, vector<1x3x2x128xf32>
    %1 = vector.extract_strided_slice %0 {offsets = [0, 0, 0, 0], sizes = [1, 1, 2, 128], strides = [1, 1, 1, 1]} : vector<1x3x2x128xf32> to vector<1x1x2x128xf32>
    %2 = vector.shape_cast %1 : vector<1x1x2x128xf32> to vector<1x2x128xf32>
    %c0_3 = arith.constant 0 : index
    %c0_4 = arith.constant 0 : index
    %3 = memref.load %arg2[%c0_3, %c0_4] : memref<3x3xf32, #tpu.memory_space<smem>>
    %4 = vector.broadcast %3 : f32 to vector<1x2x128xf32>
    %5 = arith.mulf %2, %4 : vector<1x2x128xf32>
    %6 = vector.extract_strided_slice %0 {offsets = [0, 1, 0, 0], sizes = [1, 1, 2, 128], strides = [1, 1, 1, 1]} : vector<1x3x2x128xf32> to vector<1x1x2x128xf32>
    %7 = vector.shape_cast %6 : vector<1x1x2x128xf32> to vector<1x2x128xf32>
    %c0_5 = arith.constant 0 : index
    %c1 = arith.constant 1 : index
    %8 = memref.load %arg2[%c0_5, %c1] : memref<3x3xf32, #tpu.memory_space<smem>>
    %9 = vector.broadcast %8 : f32 to vector<1x2x128xf32>
    %10 = arith.mulf %7, %9 : vector<1x2x128xf32>
    %11 = arith.addf %5, %10 : vector<1x2x128xf32>
    %12 = vector.extract_strided_slice %0 {offsets = [0, 2, 0, 0], sizes = [1, 1, 2, 128], strides = [1, 1, 1, 1]} : vector<1x3x2x128xf32> to vector<1x1x2x128xf32>
    %13 = vector.shape_cast %12 : vector<1x1x2x128xf32> to vector<1x2x128xf32>
    %c0_6 = arith.constant 0 : index
    %c2 = arith.constant 2 : index
    %14 = memref.load %arg2[%c0_6, %c2] : memref<3x3xf32, #tpu.memory_space<smem>>
    %15 = vector.broadcast %14 : f32 to vector<1x2x128xf32>
    %16 = arith.mulf %13, %15 : vector<1x2x128xf32>
    %17 = arith.addf %11, %16 : vector<1x2x128xf32>
    %c0_7 = arith.constant 0 : index
    %18 = memref.load %arg3[%c0_7] : memref<3xf32, #tpu.memory_space<smem>>
    %19 = vector.broadcast %18 : f32 to vector<1x2x128xf32>
    %20 = arith.addf %17, %19 : vector<1x2x128xf32>
    %c0_8 = arith.constant 0 : index
    %c0_9 = arith.constant 0 : index
    %c0_10 = arith.constant 0 : index
    %c0_11 = arith.constant 0 : index
    %21 = vector.load %arg5[%c0_8, %c0_9, %c0_10, %c0_11] : memref<1x3x2x128xf32, #tpu.memory_space<vmem>>, vector<1x1x2x128xf32>
    %22 = vector.shape_cast %21 : vector<1x1x2x128xf32> to vector<1x2x128xf32>
    %23 = vector.shape_cast %20 : vector<1x2x128xf32> to vector<1x1x2x128xf32>
    tpu.vector_store %arg5[%c0_8, %c0_9, %c0_10, %c0_11], %23 {strides = array<i32>} : memref<1x3x2x128xf32, #tpu.memory_space<vmem>>, vector<1x1x2x128xf32>,
    %24 = vector.extract_strided_slice %0 {offsets = [0, 0, 0, 0], sizes = [1, 1, 2, 128], strides = [1, 1, 1, 1]} : vector<1x3x2x128xf32> to vector<1x1x2x128xf32>
    %25 = vector.shape_cast %24 : vector<1x1x2x128xf32> to vector<1x2x128xf32>
    %c1_12 = arith.constant 1 : index
    %c0_13 = arith.constant 0 : index
    %26 = memref.load %arg2[%c1_12, %c0_13] : memref<3x3xf32, #tpu.memory_space<smem>>
    %27 = vector.broadcast %26 : f32 to vector<1x2x128xf32>
    %28 = arith.mulf %25, %27 : vector<1x2x128xf32>
    %29 = vector.extract_strided_slice %0 {offsets = [0, 1, 0, 0], sizes = [1, 1, 2, 128], strides = [1, 1, 1, 1]} : vector<1x3x2x128xf32> to vector<1x1x2x128xf32>
    %30 = vector.shape_cast %29 : vector<1x1x2x128xf32> to vector<1x2x128xf32>
    %c1_14 = arith.constant 1 : index
    %c1_15 = arith.constant 1 : index
    %31 = memref.load %arg2[%c1_14, %c1_15] : memref<3x3xf32, #tpu.memory_space<smem>>
    %32 = vector.broadcast %31 : f32 to vector<1x2x128xf32>
    %33 = arith.mulf %30, %32 : vector<1x2x128xf32>
    %34 = arith.addf %28, %33 : vector<1x2x128xf32>
    %35 = vector.extract_strided_slice %0 {offsets = [0, 2, 0, 0], sizes = [1, 1, 2, 128], strides = [1, 1, 1, 1]} : vector<1x3x2x128xf32> to vector<1x1x2x128xf32>
    %36 = vector.shape_cast %35 : vector<1x1x2x128xf32> to vector<1x2x128xf32>
    %c1_16 = arith.constant 1 : index
    %c2_17 = arith.constant 2 : index
    %37 = memref.load %arg2[%c1_16, %c2_17] : memref<3x3xf32, #tpu.memory_space<smem>>
    %38 = vector.broadcast %37 : f32 to vector<1x2x128xf32>
    %39 = arith.mulf %36, %38 : vector<1x2x128xf32>
    %40 = arith.addf %34, %39 : vector<1x2x128xf32>
    %c1_18 = arith.constant 1 : index
    %41 = memref.load %arg3[%c1_18] : memref<3xf32, #tpu.memory_space<smem>>
    %42 = vector.broadcast %41 : f32 to vector<1x2x128xf32>
    %43 = arith.addf %40, %42 : vector<1x2x128xf32>
    %c0_19 = arith.constant 0 : index
    %c1_20 = arith.constant 1 : index
    %c0_21 = arith.constant 0 : index
    %c0_22 = arith.constant 0 : index
    %44 = vector.load %arg5[%c0_19, %c1_20, %c0_21, %c0_22] : memref<1x3x2x128xf32, #tpu.memory_space<vmem>>, vector<1x1x2x128xf32>
    %45 = vector.shape_cast %44 : vector<1x1x2x128xf32> to vector<1x2x128xf32>
    %46 = vector.shape_cast %43 : vector<1x2x128xf32> to vector<1x1x2x128xf32>
    tpu.vector_store %arg5[%c0_19, %c1_20, %c0_21, %c0_22], %46 {strides = array<i32>} : memref<1x3x2x128xf32, #tpu.memory_space<vmem>>, vector<1x1x2x128xf32>,
    %47 = vector.extract_strided_slice %0 {offsets = [0, 0, 0, 0], sizes = [1, 1, 2, 128], strides = [1, 1, 1, 1]} : vector<1x3x2x128xf32> to vector<1x1x2x128xf32>
    %48 = vector.shape_cast %47 : vector<1x1x2x128xf32> to vector<1x2x128xf32>
    %c2_23 = arith.constant 2 : index
    %c0_24 = arith.constant 0 : index
    %49 = memref.load %arg2[%c2_23, %c0_24] : memref<3x3xf32, #tpu.memory_space<smem>>
    %50 = vector.broadcast %49 : f32 to vector<1x2x128xf32>
    %51 = arith.mulf %48, %50 : vector<1x2x128xf32>
    %52 = vector.extract_strided_slice %0 {offsets = [0, 1, 0, 0], sizes = [1, 1, 2, 128], strides = [1, 1, 1, 1]} : vector<1x3x2x128xf32> to vector<1x1x2x128xf32>
    %53 = vector.shape_cast %52 : vector<1x1x2x128xf32> to vector<1x2x128xf32>
    %c2_25 = arith.constant 2 : index
    %c1_26 = arith.constant 1 : index
    %54 = memref.load %arg2[%c2_25, %c1_26] : memref<3x3xf32, #tpu.memory_space<smem>>
    %55 = vector.broadcast %54 : f32 to vector<1x2x128xf32>
    %56 = arith.mulf %53, %55 : vector<1x2x128xf32>
    %57 = arith.addf %51, %56 : vector<1x2x128xf32>
    %58 = vector.extract_strided_slice %0 {offsets = [0, 2, 0, 0], sizes = [1, 1, 2, 128], strides = [1, 1, 1, 1]} : vector<1x3x2x128xf32> to vector<1x1x2x128xf32>
    %59 = vector.shape_cast %58 : vector<1x1x2x128xf32> to vector<1x2x128xf32>
    %c2_27 = arith.constant 2 : index
    %c2_28 = arith.constant 2 : index
    %60 = memref.load %arg2[%c2_27, %c2_28] : memref<3x3xf32, #tpu.memory_space<smem>>
    %61 = vector.broadcast %60 : f32 to vector<1x2x128xf32>
    %62 = arith.mulf %59, %61 : vector<1x2x128xf32>
    %63 = arith.addf %57, %62 : vector<1x2x128xf32>
    %c2_29 = arith.constant 2 : index
    %64 = memref.load %arg3[%c2_29] : memref<3xf32, #tpu.memory_space<smem>>
    %65 = vector.broadcast %64 : f32 to vector<1x2x128xf32>
    %66 = arith.addf %63, %65 : vector<1x2x128xf32>
    %c0_30 = arith.constant 0 : index
    %c2_31 = arith.constant 2 : index
    %c0_32 = arith.constant 0 : index
    %c0_33 = arith.constant 0 : index
    %67 = vector.load %arg5[%c0_30, %c2_31, %c0_32, %c0_33] : memref<1x3x2x128xf32, #tpu.memory_space<vmem>>, vector<1x1x2x128xf32>
    %68 = vector.shape_cast %67 : vector<1x1x2x128xf32> to vector<1x2x128xf32>
    %69 = vector.shape_cast %66 : vector<1x2x128xf32> to vector<1x1x2x128xf32>
    tpu.vector_store %arg5[%c0_30, %c2_31, %c0_32, %c0_33], %69 {strides = array<i32>} : memref<1x3x2x128xf32, #tpu.memory_space<vmem>>, vector<1x1x2x128xf32>,
    return
  }
  func.func @transform_0(%arg0: i32, %arg1: i32) -> (i32, i32) {
    %c0_i32 = arith.constant 0 : i32
    %c0_i32_0 = arith.constant 0 : i32
    %c0_i32_1 = arith.constant 0 : i32
    return %c0_i32, %c0_i32_0 : i32, i32
  }
  func.func @transform_1(%arg0: i32, %arg1: i32) -> i32 {
    %c0_i32 = arith.constant 0 : i32
    %c0_i32_0 = arith.constant 0 : i32
    return %c0_i32 : i32
  }
  func.func @transform_2(%arg0: i32, %arg1: i32) -> (i32, i32, i32, i32) {
    %c0_i32 = arith.constant 0 : i32
    %c0_i32_0 = arith.constant 0 : i32
    %c0_i32_1 = arith.constant 0 : i32
    return %arg0, %c0_i32, %arg1, %c0_i32_0 : i32, i32, i32, i32
  }
  func.func @transform_3(%arg0: i32, %arg1: i32) -> (i32, i32, i32, i32) {
    %c0_i32 = arith.constant 0 : i32
    %c0_i32_0 = arith.constant 0 : i32
    %c0_i32_1 = arith.constant 0 : i32
    return %arg0, %c0_i32, %arg1, %c0_i32_0 : i32, i32, i32, i32
  }
}

</mosaic_0001>

<bundles_post_ra>
// kernel: tpu_custom_call.1
= control target key start
LH: loop header
LB: loop body
LE: loop exit
PB: predicated region body
PF: predicated region fallthrough
CT: control target
= control target key end

     0   :  { %8 = vsyncpa [#allocation5], 0  ;;  %s943_s0 = inlined_call_operand.hbm [shape: f32[3,3], index: 0, kind: input, shape index: {}]   ;;  %s944_s1 = inlined_call_operand.hbm [shape: f32[3], index: 1, kind: input, shape index: {}]   ;;  %s945_s2 = inlined_call_operand.hbm [shape: f32[2,3,2,128], index: 2, kind: input, shape index: {}]   ;;  %s946_s3 = inlined_call_operand.hbm [shape: f32[2,3,2,128], index: 3, kind: output, shape index: {}]  }
   0x1   :  { %9 = vsyncpa [#allocation7], 0 }
   0x2   :  { %10 = vsyncpa [#allocation3], 0 }
   0x3   :  { %12 = vsyncpa [#allocation3 + $0x1], 0 }
   0x4   :  { %13 = vsyncpa [#allocation4], 0 }
   0x5   :  { %15 = vsyncpa [#allocation4 + $0x1], 0  ;;  %s693_s12 = smov 0   ;;  %s695_s13 = smov 0  }
   0x6   :  { %s697_s14 = smov 0   ;;  %s699_s15 = smov 0  }
   0x7   :  { %s701_s16 = smov 0   ;;  %s703_s17 = smov 0  }
   0x8 LB: > { %s401_s18 = sadd.s32 4294967295, %s663_s17   ;;  %s402_s19 = sadd.s32 4294967294, %s663_s17   ;;  %s663_s17 = sphi %s703_s17, %s21_s17   ;;  %s659_s16 = sphi %s701_s16, %s970_s16   ;;  %s655_s15 = sphi %s699_s15, %s969_s15   ;;  %s651_s14 = sphi %s697_s14, %s968_s14   ;;  %s647_s13 = sphi %s695_s13, %s967_s13   ;;  %s643_s12 = sphi %s693_s12, %s966_s12  }
   0x9   : > { %p91_p0 = scmp.ne.s32.totalorder %s651_s14, %s647_s13  ;;  %p92_p1 = scmp.eq.s32.totalorder %s663_s17, 0 }
   0xa   : > { %p97_p2 = scmp.ne.s32.totalorder %s647_s13, %s643_s12  ;;  %p731_p3 = scmp.eq.s32.totalorder %s401_s18, 0 }
   0xb   : > { %p123_p4 = scmp.eq.s32.totalorder %s401_s18, 1  ;;  %p93_p5 = por %p92_p1, %p91_p0 }
   0xc   : > { %s951_s21 = scalar_select %p731_p3, 1, 0 }
   0xd   : > { %p129_p6 = scmp.eq.s32.totalorder %s402_s19, 1  ;;  %p737_p7 = por %p731_p3, %p97_p2 }
   0xe   : > { %p741_p8 = por %p123_p4, %p91_p0  ;;  %p403_p10 = scmp.ge.s32.totalorder %s663_s17, 1 }
   0xf   : > { %s952_s22 = scalar_select %p737_p7, 1, 0 }
  0x10   : > { %s953_s23 = scalar_select %p741_p8, 1, 0 }
  0x11   : > { %p745_p9 = por %p129_p6, %p97_p2  ;;  %p136_p11 = scmp.lt.s32.totalorder %s663_s17, 3 }
  0x12   : > { %p459_p1 = scmp.lt.s32.totalorder %s663_s17, 2  ;;  %s167_s27 = sand.u32 1, %s651_s14  }
  0x13   : > { %s954_s24 = scalar_select %p745_p9, 1, 0 }
  0x14   : > { %p752_p13 = pnand %p403_p10, %p136_p11  ;;  %p759_p7 = pnand %p459_p1, %p93_p5 }
  0x15   : > { %p957_p0 = scmp.ne.s32.totalorder %s951_s21, 0  ;;  %s33_s29 = sadd.s32 1, %s659_s16 }
  0x16   : > { %p442_p3 = pneg %p752_p13  ;;  %p771_p4 = scmp.ge.s32.totalorder %s33_s29, 2 }
  0x17   : > { %s517_s6 = scalar_lea.hbm %s943_s0, 64 }
  0x18   : > { %p766_p2 = pnand %p442_p3, %p957_p0  ;;  %p518_p5 = scmp.ne.s32.totalorder %s943_s0, %s517_s6 }
  0x19   : > { %p524_p11 = scmp.lt.u32.totalorder %s517_s6, %s943_s0 }
  0x1a   : > { %p519_p6 = pneg %p766_p2 }
  0x1c   : > { %p520_p3 = pnand %p519_p6, %p518_p5 }
  0x1e   : > { %p521_p10 = pneg %p520_p3 }
  0x20   : > { %p526_p1 = pnand %p524_p11, %p521_p10 }
  0x22   : > { %529 = shalt.err (!%p526_p1)
}
  0x23   : > { %s665_s11 = smov [#allocation2]   ;;  %s530_s7 = scalar_lea.hbm %s944_s1, 16 }
  0x24   : > { %445 = dma.hbm_to_smem (!%p766_p2), %s943_s0, 64, %s665_s11, [#allocation5]  }
  0x25   : > { %p531_p0 = scmp.ne.s32.totalorder %s944_s1, %s530_s7  ;;  %p537_p10 = scmp.lt.u32.totalorder %s530_s7, %s944_s1 }
  0x27   : > { %p533_p5 = pnand %p531_p0, %p519_p6 }
  0x29   : > { %p534_p3 = pneg %p533_p5 }
  0x2b   : > { %p539_p11 = pnand %p537_p10, %p534_p3 }
  0x2d   : > { %542 = shalt.err (!%p539_p11)
}
  0x2e   : > { %s666_s10 = smov [#allocation6]   ;;  %s972_s29 = smov (%p771_p4, %s33_s29), 0 }
  0x2f   : > { %448 = dma.hbm_to_smem (!%p766_p2), %s944_s1, 16, %s666_s10, [#allocation7]  }
  0x30   : > { %s426_s20 = smul.u32 6, %s167_s27  ;;  %s79_s28 = ssub.s32 %s659_s16, %s972_s29 }
  0x31   : > { %s427_s19 = smul.u32 96, %s659_s16  ;;  %p82_p6 = scmp.eq.s32.totalorder %s79_s28, 0 }
  0x32   : > { %s171_s8 = scalar_lea.vmem [#allocation8], %s426_s20  ;;  %s960_s30 = sadd.s32 1, %s651_s14 }
  0x33   : > { %s817_s7 = scalar_lea.hbm %s945_s2, %s427_s19  ;;  %s179_s6 = sshll.u32 %s171_s8, 4  ;;  %s824_s6 = int_to_ptr.vmem [resolvable:$true] %s179_s6 }
  0x34   : > { %s822_s9 = scalar_select %p82_p6, %s651_s14, %s960_s30  }
  0x35   : > { %s828_s10 = scalar_lea.sflag [#allocation3], %s167_s27  ;;  %s543_s11 = scalar_lea.hbm %s817_s7, 96 }
  0x36   : > { %p544_p2 = scmp.ne.s32.totalorder %s817_s7, %s543_s11  ;;  %p545_p4 = pneg %p759_p7 }
  0x37   : > { %s548_s20 = scalar_lea.hbm %s945_s2, 192  ;;  %p549_p5 = scmp.lt.u32.totalorder %s817_s7, %s945_s2 }
  0x38   : > { %p546_p1 = pnand %p545_p4, %p544_p2  ;;  %p550_p3 = scmp.lt.u32.totalorder %s548_s20, %s543_s11 }
  0x39   : > { %p552_p11 = scmp.lt.u32.totalorder %s543_s11, %s817_s7 }
  0x3a   : > { %p547_p0 = pneg %p546_p1  ;;  %p551_p10 = por %p550_p3, %p549_p5 }
  0x3c   : > { %p553_p6 = por %p552_p11, %p551_p10 }
  0x3e   : > { %p554_p12 = pnand %p553_p6, %p547_p0 }
  0x40   : > { %557 = shalt.err (!%p554_p12)
}
  0x41   : > { %s558_s27 = scalar_lea.vmem %s824_s6, 96  ;;  %s667_s5 = smov [#allocation8]  }
  0x42   : > { %p559_p2 = scmp.ne.s32.totalorder %s824_s6, %s558_s27  ;;  %s563_s8 = sshll.u32 %s667_s5, 4  ;;  %s564_s8 = int_to_ptr.vmem [resolvable:$false] %s563_s8 }
  0x43   : > { %s565_s30 = scalar_lea.vmem %s564_s8, 192  ;;  %p566_p8 = scmp.lt.s32.totalorder %s824_s6, %s564_s8 }
  0x44   : > { %p561_p1 = pnand %p559_p2, %p545_p4  ;;  %p567_p5 = scmp.lt.s32.totalorder %s565_s30, %s558_s27 }
  0x46   : > { %p562_p9 = pneg %p561_p1  ;;  %p568_p3 = por %p567_p5, %p566_p8 }
  0x48   : > { %p569_p10 = pnand %p568_p3, %p562_p9 }
  0x4a   : > { %572 = shalt.err (!%p569_p10)
}
  0x4b   : > { %s668_s11 = smov 32   ;;  %s669_s18 = smov 2  }
  0x4c   : > { %452 = dma.hbm_to_vmem [thread:$0]  (!%p759_p7), %s817_s7, 96, %s824_s6, %s828_s10, %s668_s11, %s668_s11, %s669_s18  }
  0x4d   : > { %191 = sbr.rel (%p752_p13) target bundleno = 128 (0x80), region = 32  ;;  %p961_p12 = scmp.ne.s32.totalorder (!%p752_p13), %s951_s21, 0 }
  0x54   : > { %626 = dma.done.wait (%p961_p12), [#allocation5], 64  }
  0x55   : > { %628 = vsyncadd (%p961_p12), [#allocation5], 4294967232 }
  0x56   : > { %630 = dma.done.wait (%p961_p12), [#allocation7], 16  }
  0x57   : > { %632 = vsyncadd (%p961_p12), [#allocation7], 4294967280  ;;  %s867_s28 = sand.u32 1, %s647_s13   ;;  %p962_p7 = scmp.ne.s32.totalorder %s952_s22, 0 }
  0x58   : > { %s428_s25 = smul.u32 6, %s867_s28  ;;  %s202_s26 = scalar_lea.sflag [#allocation3], %s867_s28 }
  0x5a   : > { %s205_s7 = scalar_lea.vmem [#allocation8], %s428_s25 }
  0x5b   : > { %634 = dma.done.wait (%p962_p7), %s202_s26, 96  }
  0x5c   : > { %636 = vsyncadd (%p962_p7), %s202_s26, 4294967200 }
  0x5d   : > { %210 = sfence }
  0x5e   : > { %s232_s6 = sld [smem:[#allocation2]]  ;;  %s411_s21 = sld [smem:[#allocation2 + $0x1]]  ;;  %v229_v0 = vld [vmem:[%s205_s7] sm:$0x3]  ;;  %v230_v1 = vld [vmem:[%s205_s7 + $0x2] sm:$0x3] }
  0x5f   : > { %s412_s10 = sld [smem:[#allocation2 + $0x2]]  ;;  %s877_s20 = sld [smem:[#allocation6]]  ;;  %v231_v2 = vld [vmem:[%s205_s7 + $0x4] sm:$0x3] }
  0x60   : > { %s413_s19 = sld [smem:[#allocation2 + $0x80]]  ;;  %s414_s4 = sld [smem:[#allocation2 + $0x81]] }
  0x61   : > { %s415_s27 = sld [smem:[#allocation2 + $0x82]]  ;;  %s879_s5 = sld [smem:[#allocation6 + $0x1]] }
  0x62   : > { %s418_s8 = sld [smem:[#allocation2 + $0x100]]  ;;  %s419_s30 = sld [smem:[#allocation2 + $0x101]] }
  0x63   : > { %s420_s22 = sld [smem:[#allocation2 + $0x102]]  ;;  %s228_s18 = scalar_lea.vmem [#allocation9], %s428_s25 }
  0x64   : > { %v233_v3 = vstv %s232_s6  ;;  %v236_v4 = vstv %s411_s21  ;;  %s881_s11 = sld [smem:[#allocation6 + $0x2]]  ;;  %s294_s26 = sshll.u32 %s228_s18, 4  ;;  %s889_s26 = int_to_ptr.vmem [resolvable:$true] %s294_s26 }
  0x65   : > { %v234_v5 = vmul.f32 %v233_v3, %v229_v0  ;;  %v237_v6 = vmul.f32 %v236_v4, %v230_v1  ;;  %v240_v7 = vstv %s412_s10  ;;  %v244_v13 = vstv %s877_s20  ;;  %s429_s7 = smul.u32 96, %s655_s15  ;;  %s280_s10 = scalar_lea.sflag [#allocation4], %s867_s28 }
  0x66   : > { %v241_v8 = vmul.f32 %v240_v7, %v231_v2  ;;  %v248_v9 = vstv %s413_s19  ;;  %v251_v12 = vstv %s414_s4  ;;  %s573_s20 = scalar_lea.vmem %s889_s26, 96  ;;  %p963_p9 = scmp.ne.s32.totalorder %s953_s23, 0 }
  0x67   : > { %v238_v10 = vadd.f32 %v237_v6, %v234_v5  ;;  %v249_v11 = vmul.f32 %v248_v9, %v229_v0  ;;  %v252_v14 = vmul.f32 %v251_v12, %v230_v1  ;;  %v255_v15 = vstv %s415_s27  ;;  %s894_s25 = scalar_lea.hbm %s946_s3, %s429_s7  ;;  %p574_p8 = scmp.ne.s32.totalorder %s889_s26, %s573_s20 }
  0x68   : > { %v256_v17 = vmul.f32 %v255_v15, %v231_v2  ;;  %v264_v18 = vstv %s418_s8  ;;  %v267_v19 = vstv %s419_s30  ;;  %v259_v25 = vstv %s879_s5  ;;  %s670_s15 = smov [#allocation9]  }
  0x69   : > { %v242_v16 = vadd.f32 %v241_v8, %v238_v10  ;;  %v253_v20 = vadd.f32 %v252_v14, %v249_v11  ;;  %v265_v21 = vmul.f32 %v264_v18, %v229_v0  ;;  %v268_v22 = vmul.f32 %v267_v19, %v230_v1  ;;  %p575_p13 = pnand %p574_p8, %p963_p9  ;;  %s577_s19 = sshll.u32 %s670_s15, 4  ;;  %s578_s19 = int_to_ptr.vmem [resolvable:$false] %s577_s19 }
  0x6a   : > { %v271_v23 = vstv %s420_s22  ;;  %v275_v29 = vstv %s881_s11  ;;  %s579_s4 = scalar_lea.vmem %s578_s19, 192  ;;  %p580_p0 = scmp.lt.s32.totalorder %s889_s26, %s578_s19 }
  0x6b   : > { %v245_v24 = vadd.f32 %v244_v13, %v242_v16  ;;  %v272_v26 = vmul.f32 %v271_v23, %v231_v2  ;;  %v257_v27 = vadd.f32 %v256_v17, %v253_v20  ;;  %v269_v28 = vadd.f32 %v268_v22, %v265_v21  ;;  %p576_p4 = pneg %p575_p13  ;;  %p581_p11 = scmp.lt.s32.totalorder %s579_s4, %s573_s20 }
  0x6d   : > { %246 = vst [vmem:[%s228_s18] sm:$0x3] %v245_v24  ;;  %v260_v30 = vadd.f32 %v259_v25, %v257_v27  ;;  %v273_v31 = vadd.f32 %v272_v26, %v269_v28  ;;  %p582_p6 = por %p581_p11, %p580_p0 }
  0x6f   : > { %417 = vst [vmem:[%s228_s18 + $0x2] sm:$0x3] %v260_v30  ;;  %v276_v32 = vadd.f32 %v275_v29, %v273_v31  ;;  %p583_p2 = pnand %p582_p6, %p576_p4 }
  0x71   : > { %422 = vst [vmem:[%s228_s18 + $0x4] sm:$0x3] %v276_v32 }
  0x72   : > { %586 = shalt.err (!%p583_p2)
}
  0x73   : > { %s587_s27 = scalar_lea.hbm %s894_s25, 96  ;;  %s591_s30 = scalar_lea.hbm %s946_s3, 192 }
  0x74   : > { %p588_p1 = scmp.ne.s32.totalorder %s894_s25, %s587_s27  ;;  %p592_p10 = scmp.lt.u32.totalorder %s894_s25, %s946_s3 }
  0x75   : > { %p593_p12 = scmp.lt.u32.totalorder %s591_s30, %s587_s27  ;;  %p595_p8 = scmp.lt.u32.totalorder %s587_s27, %s894_s25 }
  0x76   : > { %p589_p5 = pnand %p588_p1, %p963_p9 }
  0x77   : > { %p594_p7 = por %p593_p12, %p592_p10 }
  0x78   : > { %p590_p3 = pneg %p589_p5 }
  0x79   : > { %p596_p13 = por %p595_p8, %p594_p7 }
  0x7b   : > { %p597_p4 = pnand %p596_p13, %p590_p3 }
  0x7d   : > { %600 = shalt.err (!%p597_p4)
}
  0x7e   : > { %s671_s18 = smov 32   ;;  %s672_s7 = smov 2  }
  0x7f   : > { %440 = dma.vmem_to_hbm [thread:$0]  (%p963_p9), %s889_s26, 96, %s894_s25, %s280_s10, %s671_s18, %s671_s18, %s672_s7  }
  0x80 PF: > { %s309_s6 = sand.u32 1, %s643_s12   ;;  %p964_p0 = scmp.ne.s32.totalorder %s954_s24, 0 }
  0x81   : > { %p965_p11 = scmp.ge.s32.totalorder %s663_s17, 2  ;;  %s310_s21 = scalar_lea.sflag [#allocation4], %s309_s6 }
  0x83   : > { %p454_p6 = pnand %p965_p11, %p964_p0 }
  0x85   : > { %638 = dma.done.wait (!%p454_p6), %s310_s21, 96  }
  0x86   : > { %640 = vsyncadd (!%p454_p6), %s310_s21, 4294967200  ;;  %s21_s17 = sadd.s32 1, %s663_s17   ;;  %s966_s12 = smov %s647_s13 }
  0x87   : > { %p18_p2 = scmp.ge.s32.totalorder %s21_s17, 4   ;;  %s967_s13 = smov %s651_s14 }
  0x88   : > { %s968_s14 = smov %s822_s9  ;;  %s969_s15 = smov %s659_s16 }
  0x89   : > { %s970_s16 = smov %s972_s29  ;;  %20 = sbr.rel (!%p18_p2) target bundleno = 8 (0x8), region = 88 }
  0x90   :  { %315 = vsyncpa [#allocation3], 1 }
  0x91   :  { %317 = vsyncpa [#allocation3 + $0x1], 1 }
  0x92   :  { %318 = vsyncpa [#allocation4], 1 }
  0x93   :  { %320 = vsyncpa [#allocation4 + $0x1], 1 }
  0x94   :  { %321 = vsyncpa [#allocation5], 1 }
  0x95   :  { %323 = vsyncpa [#allocation5 + $0x1], 1 }
  0x96   :  { %324 = vsyncpa [#allocation7], 1 }

</bundles_post_ra>
